<compile_context>
chip_gen: v5e
topology: v5e:2x2
jax: 0.10.0
libtpu: 0.0.40
codegen_flags: <defaults>
</compile_context>

<pallas_src>
import math

import jax
import jax.numpy as jnp
from jax import lax
from jax.experimental import pallas as pl
from jax.experimental.pallas import tpu as pltpu


# ----------------------------------------------------------------------------
# Fused Pallas kernel: top-k row gather + tanh scaling + all three GRU gates
# ----------------------------------------------------------------------------

def _mat_gru_cell_kernel(idx_ref,     # SMEM (k,)   int32 : top-k node indices
                         scale_ref,   # VMEM (k, 1) f32   : tanh(masked_scores[idx])
                         z_ref,       # VMEM (N, rows)    : prev_Z node embeddings
                         q_ref,       # VMEM (rows, k)    : prev_Q
                         wu_ref, uu_ref, bu_ref,
                         wr_ref, ur_ref, br_ref,
                         wh_ref, uh_ref, bh_ref,
                         o_ref,       # VMEM (rows, k)    : new_Q
                         zt_ref):     # VMEM scratch (k, rows) : z_topk^T
    k = zt_ref.shape[0]

    # --- TopK gather: z_topk^T[i, :] = prev_Z[idx[i], :]  (k is small, unrolled)
    for i in range(k):
        zt_ref[pl.ds(i, 1), :] = z_ref[pl.ds(idx_ref[i], 1), :]

    zt = zt_ref[...] * scale_ref[...]                 # (k, rows) scaled by tanh(score)
    q = q_ref[...]                                    # (rows, k)

    # W @ z_topk without materializing z_topk or W^T:
    # result[r, c] = sum_j W[r, j] * zt[c, j]
    dn = (((1,), (1,)), ((), ()))

    def gate(w_ref, u_ref, b_ref, h):
        wz = lax.dot_general(w_ref[...], zt, dn, preferred_element_type=jnp.float32)
        uh = jnp.dot(u_ref[...], h, preferred_element_type=jnp.float32)
        return wz + uh + b_ref[...]

    def sigmoid(x):                                   # exp + approx recip -> EUP slot
        return pl.reciprocal(1.0 + jnp.exp(-x), approx=True)

    update = sigmoid(gate(wu_ref, uu_ref, bu_ref, q))
    reset = sigmoid(gate(wr_ref, ur_ref, br_ref, q))
    h_cap = jnp.tanh(gate(wh_ref, uh_ref, bh_ref, reset * q))

    o_ref[...] = (1.0 - update) * q + update * h_cap


# ----------------------------------------------------------------------------
# Wrapper: TopK scoring / selection in JAX, everything else in the fused kernel
# ----------------------------------------------------------------------------

def _topk_select(prev_Z, scorer, mask, k):
    """TopK.forward up to (but not including) the gather."""
    scores = prev_Z @ scorer / jnp.linalg.norm(scorer) + mask        # (N, 1)
    flat = scores.reshape(-1)
    # TODO(synk): top-k (sort) has no clean Pallas TPU equivalent; done in XLA.
    vals, idx = lax.top_k(flat, k)
    valid = vals > -jnp.inf
    # u.pad_with_last_val semantics: slots dropped because of -inf scores are
    # replaced by the last valid index.
    last_valid = idx[jnp.maximum(jnp.sum(valid) - 1, 0)]
    idx = jnp.where(valid, idx, last_valid)
    scale = jnp.tanh(flat[idx])
    return idx.astype(jnp.int32), scale.astype(jnp.float32)


def mat_gru_cell(prev_Q, prev_Z, mask, params):
    rows, k = prev_Q.shape
    idx, scale = _topk_select(prev_Z, params["scorer"], mask, k)

    smem = pl.BlockSpec(memory_space=pltpu.MemorySpace.SMEM)
    vmem = pl.BlockSpec(memory_space=pltpu.MemorySpace.VMEM)

    return pl.pallas_call(
        _mat_gru_cell_kernel,
        out_shape=jax.ShapeDtypeStruct((rows, k), jnp.float32),
        in_specs=[smem, vmem] + [vmem] * 11,
        out_specs=vmem,
        scratch_shapes=[pltpu.VMEM((k, rows), jnp.float32)],
    )(idx, scale.reshape(k, 1), prev_Z, prev_Q,
      params["W_u"], params["U_u"], params["b_u"],
      params["W_r"], params["U_r"], params["b_r"],
      params["W_h"], params["U_h"], params["b_h"])


# ----------------------------------------------------------------------------
# Pure-JAX reference (mirrors the PyTorch forward exactly)
# ----------------------------------------------------------------------------

def mat_gru_cell_ref(prev_Q, prev_Z, mask, p):
    rows, k = prev_Q.shape
    idx, scale = _topk_select(prev_Z, p["scorer"], mask, k)
    z_topk = (prev_Z[idx] * scale[:, None]).T                        # (rows, k)
    sig = jax.nn.sigmoid
    upd = sig(p["W_u"] @ z_topk + p["U_u"] @ prev_Q + p["b_u"])
    rst = sig(p["W_r"] @ z_topk + p["U_r"] @ prev_Q + p["b_r"])
    hc = jnp.tanh(p["W_h"] @ z_topk + p["U_h"] @ (rst * prev_Q) + p["b_h"])
    return (1.0 - upd) * prev_Q + upd * hc


# ----------------------------------------------------------------------------
# Deterministic synthetic parameters (matching the PyTorch init scheme)
# ----------------------------------------------------------------------------

def make_params(key, rows, cols):
    ks = jax.random.split(key, 7)
    stdv = 1.0 / math.sqrt(rows)

    def unif(k, shape):
        return jax.random.uniform(k, shape, jnp.float32, -stdv, stdv)

    zeros = jnp.zeros((rows, cols), jnp.float32)
    return dict(
        scorer=unif(ks[0], (rows, 1)),
        W_u=unif(ks[1], (rows, rows)), U_u=unif(ks[2], (rows, rows)), b_u=zeros,
        W_r=unif(ks[3], (rows, rows)), U_r=unif(ks[4], (rows, rows)), b_r=zeros,
        W_h=unif(ks[5], (rows, rows)), U_h=unif(ks[6], (rows, rows)), b_h=zeros,
    )


# ----------------------------------------------------------------------------
# main
# ----------------------------------------------------------------------------

if __name__ == "__main__":
    rows = 32        # args.rows  (feature dim)
    cols = 8         # args.cols  (= k of TopK)
    n_nodes = 64     # number of nodes in prev_Z

    key = jax.random.PRNGKey(0)
    kq, kz, km, kp = jax.random.split(key, 4)

    prev_Q = jax.random.normal(kq, (rows, cols), jnp.float32)
    prev_Z = jax.random.normal(kz, (n_nodes, rows), jnp.float32)
    # mask: 0 for valid nodes, -inf for masked-out nodes (as in EvolveGCN)
    mask = jnp.where(jax.random.uniform(km, (n_nodes, 1)) < 0.25,
                     -jnp.inf, 0.0).astype(jnp.float32)
    params = make_params(kp, rows, cols)

    new_Q = jax.jit(mat_gru_cell)(prev_Q, prev_Z, mask, params)
    new_Q = jax.block_until_ready(new_Q)

    assert new_Q.shape == (rows, cols)
    ref = mat_gru_cell_ref(prev_Q, prev_Z, mask, params)
    err = float(jnp.max(jnp.abs(new_Q - ref)))
    assert err < 1e-2, f"max abs error vs reference: {err}"

    print("KERNEL_OK")
</pallas_src>

<mosaic_0001>
module attributes {stable_mosaic.version = 11 : i64} {
  func.func @_mat_gru_cell_kernel(%arg0: memref<8xi32, #tpu.memory_space<smem>>, %arg1: memref<8x1xf32, #tpu.memory_space<vmem>>, %arg2: memref<64x32xf32, #tpu.memory_space<vmem>>, %arg3: memref<32x8xf32, #tpu.memory_space<vmem>>, %arg4: memref<32x32xf32, #tpu.memory_space<vmem>>, %arg5: memref<32x32xf32, #tpu.memory_space<vmem>>, %arg6: memref<32x8xf32, #tpu.memory_space<vmem>>, %arg7: memref<32x32xf32, #tpu.memory_space<vmem>>, %arg8: memref<32x32xf32, #tpu.memory_space<vmem>>, %arg9: memref<32x8xf32, #tpu.memory_space<vmem>>, %arg10: memref<32x32xf32, #tpu.memory_space<vmem>>, %arg11: memref<32x32xf32, #tpu.memory_space<vmem>>, %arg12: memref<32x8xf32, #tpu.memory_space<vmem>>, %arg13: memref<32x8xf32, #tpu.memory_space<vmem>>, %arg14: memref<8x32xf32, #tpu.memory_space<vmem>>) attributes {dimension_semantics = [], scalar_prefetch = 0 : i64, scratch_operands = 1 : i64, tpu.core_type = #tpu.core_type<tc>} {
    %c0 = arith.constant 0 : index
    %0 = memref.load %arg0[%c0] : memref<8xi32, #tpu.memory_space<smem>>
    %1 = arith.index_cast %0 : i32 to index
    %c0_0 = arith.constant 0 : index
    %2 = vector.load %arg2[%1, %c0_0] : memref<64x32xf32, #tpu.memory_space<vmem>>, vector<1x32xf32>
    %c0_1 = arith.constant 0 : index
    %c0_2 = arith.constant 0 : index
    %3 = vector.load %arg14[%c0_1, %c0_2] : memref<8x32xf32, #tpu.memory_space<vmem>>, vector<1x32xf32>
    tpu.vector_store %arg14[%c0_1, %c0_2], %2 {strides = array<i32>} : memref<8x32xf32, #tpu.memory_space<vmem>>, vector<1x32xf32>,
    %c1 = arith.constant 1 : index
    %4 = memref.load %arg0[%c1] : memref<8xi32, #tpu.memory_space<smem>>
    %5 = arith.index_cast %4 : i32 to index
    %c0_3 = arith.constant 0 : index
    %6 = vector.load %arg2[%5, %c0_3] : memref<64x32xf32, #tpu.memory_space<vmem>>, vector<1x32xf32>
    %c1_4 = arith.constant 1 : index
    %c0_5 = arith.constant 0 : index
    %7 = vector.load %arg14[%c1_4, %c0_5] : memref<8x32xf32, #tpu.memory_space<vmem>>, vector<1x32xf32>
    tpu.vector_store %arg14[%c1_4, %c0_5], %6 {strides = array<i32>} : memref<8x32xf32, #tpu.memory_space<vmem>>, vector<1x32xf32>,
    %c2 = arith.constant 2 : index
    %8 = memref.load %arg0[%c2] : memref<8xi32, #tpu.memory_space<smem>>
    %9 = arith.index_cast %8 : i32 to index
    %c0_6 = arith.constant 0 : index
    %10 = vector.load %arg2[%9, %c0_6] : memref<64x32xf32, #tpu.memory_space<vmem>>, vector<1x32xf32>
    %c2_7 = arith.constant 2 : index
    %c0_8 = arith.constant 0 : index
    %11 = vector.load %arg14[%c2_7, %c0_8] : memref<8x32xf32, #tpu.memory_space<vmem>>, vector<1x32xf32>
    tpu.vector_store %arg14[%c2_7, %c0_8], %10 {strides = array<i32>} : memref<8x32xf32, #tpu.memory_space<vmem>>, vector<1x32xf32>,
    %c3 = arith.constant 3 : index
    %12 = memref.load %arg0[%c3] : memref<8xi32, #tpu.memory_space<smem>>
    %13 = arith.index_cast %12 : i32 to index
    %c0_9 = arith.constant 0 : index
    %14 = vector.load %arg2[%13, %c0_9] : memref<64x32xf32, #tpu.memory_space<vmem>>, vector<1x32xf32>
    %c3_10 = arith.constant 3 : index
    %c0_11 = arith.constant 0 : index
    %15 = vector.load %arg14[%c3_10, %c0_11] : memref<8x32xf32, #tpu.memory_space<vmem>>, vector<1x32xf32>
    tpu.vector_store %arg14[%c3_10, %c0_11], %14 {strides = array<i32>} : memref<8x32xf32, #tpu.memory_space<vmem>>, vector<1x32xf32>,
    %c4 = arith.constant 4 : index
    %16 = memref.load %arg0[%c4] : memref<8xi32, #tpu.memory_space<smem>>
    %17 = arith.index_cast %16 : i32 to index
    %c0_12 = arith.constant 0 : index
    %18 = vector.load %arg2[%17, %c0_12] : memref<64x32xf32, #tpu.memory_space<vmem>>, vector<1x32xf32>
    %c4_13 = arith.constant 4 : index
    %c0_14 = arith.constant 0 : index
    %19 = vector.load %arg14[%c4_13, %c0_14] : memref<8x32xf32, #tpu.memory_space<vmem>>, vector<1x32xf32>
    tpu.vector_store %arg14[%c4_13, %c0_14], %18 {strides = array<i32>} : memref<8x32xf32, #tpu.memory_space<vmem>>, vector<1x32xf32>,
    %c5 = arith.constant 5 : index
    %20 = memref.load %arg0[%c5] : memref<8xi32, #tpu.memory_space<smem>>
    %21 = arith.index_cast %20 : i32 to index
    %c0_15 = arith.constant 0 : index
    %22 = vector.load %arg2[%21, %c0_15] : memref<64x32xf32, #tpu.memory_space<vmem>>, vector<1x32xf32>
    %c5_16 = arith.constant 5 : index
    %c0_17 = arith.constant 0 : index
    %23 = vector.load %arg14[%c5_16, %c0_17] : memref<8x32xf32, #tpu.memory_space<vmem>>, vector<1x32xf32>
    tpu.vector_store %arg14[%c5_16, %c0_17], %22 {strides = array<i32>} : memref<8x32xf32, #tpu.memory_space<vmem>>, vector<1x32xf32>,
    %c6 = arith.constant 6 : index
    %24 = memref.load %arg0[%c6] : memref<8xi32, #tpu.memory_space<smem>>
    %25 = arith.index_cast %24 : i32 to index
    %c0_18 = arith.constant 0 : index
    %26 = vector.load %arg2[%25, %c0_18] : memref<64x32xf32, #tpu.memory_space<vmem>>, vector<1x32xf32>
    %c6_19 = arith.constant 6 : index
    %c0_20 = arith.constant 0 : index
    %27 = vector.load %arg14[%c6_19, %c0_20] : memref<8x32xf32, #tpu.memory_space<vmem>>, vector<1x32xf32>
    tpu.vector_store %arg14[%c6_19, %c0_20], %26 {strides = array<i32>} : memref<8x32xf32, #tpu.memory_space<vmem>>, vector<1x32xf32>,
    %c7 = arith.constant 7 : index
    %28 = memref.load %arg0[%c7] : memref<8xi32, #tpu.memory_space<smem>>
    %29 = arith.index_cast %28 : i32 to index
    %c0_21 = arith.constant 0 : index
    %30 = vector.load %arg2[%29, %c0_21] : memref<64x32xf32, #tpu.memory_space<vmem>>, vector<1x32xf32>
    %c7_22 = arith.constant 7 : index
    %c0_23 = arith.constant 0 : index
    %31 = vector.load %arg14[%c7_22, %c0_23] : memref<8x32xf32, #tpu.memory_space<vmem>>, vector<1x32xf32>
    tpu.vector_store %arg14[%c7_22, %c0_23], %30 {strides = array<i32>} : memref<8x32xf32, #tpu.memory_space<vmem>>, vector<1x32xf32>,
    %c0_24 = arith.constant 0 : index
    %c0_25 = arith.constant 0 : index
    %32 = vector.load %arg14[%c0_24, %c0_25] : memref<8x32xf32, #tpu.memory_space<vmem>>, vector<8x32xf32>
    %c0_26 = arith.constant 0 : index
    %c0_27 = arith.constant 0 : index
    %33 = vector.load %arg1[%c0_26, %c0_27] : memref<8x1xf32, #tpu.memory_space<vmem>>, vector<8x1xf32>
    %34 = vector.broadcast %33 : vector<8x1xf32> to vector<8x32xf32>
    %35 = arith.mulf %32, %34 : vector<8x32xf32>
    %c0_28 = arith.constant 0 : index
    %c0_29 = arith.constant 0 : index
    %36 = vector.load %arg3[%c0_28, %c0_29] : memref<32x8xf32, #tpu.memory_space<vmem>>, vector<32x8xf32>
    %c0_30 = arith.constant 0 : index
    %c0_31 = arith.constant 0 : index
    %37 = vector.load %arg4[%c0_30, %c0_31] : memref<32x32xf32, #tpu.memory_space<vmem>>, vector<32x32xf32>
    %cst = arith.constant dense<0.000000e+00> : vector<32x8xf32>
    %38 = tpu.matmul %37, %35, %cst {dimension_numbers = #tpu.dot_dimension_numbers<[1], [1], [0], [0], [0, 0, 1, 0], [], []>} : vector<32x32xf32>, vector<8x32xf32>, vector<32x8xf32> -> vector<32x8xf32>
    %c0_32 = arith.constant 0 : index
    %c0_33 = arith.constant 0 : index
    %39 = vector.load %arg5[%c0_32, %c0_33] : memref<32x32xf32, #tpu.memory_space<vmem>>, vector<32x32xf32>
    %cst_34 = arith.constant dense<0.000000e+00> : vector<32x8xf32>
    %40 = tpu.matmul %39, %36, %cst_34 {dimension_numbers = #tpu.dot_dimension_numbers<[1], [0], [0], [1], [0, 0, 1, 1], [], []>} : vector<32x32xf32>, vector<32x8xf32>, vector<32x8xf32> -> vector<32x8xf32>
    %41 = arith.addf %38, %40 : vector<32x8xf32>
    %c0_35 = arith.constant 0 : index
    %c0_36 = arith.constant 0 : index
    %42 = vector.load %arg6[%c0_35, %c0_36] : memref<32x8xf32, #tpu.memory_space<vmem>>, vector<32x8xf32>
    %43 = arith.addf %41, %42 : vector<32x8xf32>
    %cst_37 = arith.constant 0.000000e+00 : f32
    %44 = vector.broadcast %cst_37 : f32 to vector<32x8xf32>
    %45 = arith.subf %44, %43 : vector<32x8xf32>
    %46 = math.exp %45 : vector<32x8xf32>
    %cst_38 = arith.constant 1.000000e+00 : f32
    %47 = vector.broadcast %cst_38 : f32 to vector<32x8xf32>
    %48 = arith.addf %47, %46 : vector<32x8xf32>
    %49 = tpu.reciprocal %48 {approx = true} : vector<32x8xf32> -> vector<32x8xf32>
    %c0_39 = arith.constant 0 : index
    %c0_40 = arith.constant 0 : index
    %50 = vector.load %arg7[%c0_39, %c0_40] : memref<32x32xf32, #tpu.memory_space<vmem>>, vector<32x32xf32>
    %cst_41 = arith.constant dense<0.000000e+00> : vector<32x8xf32>
    %51 = tpu.matmul %50, %35, %cst_41 {dimension_numbers = #tpu.dot_dimension_numbers<[1], [1], [0], [0], [0, 0, 1, 0], [], []>} : vector<32x32xf32>, vector<8x32xf32>, vector<32x8xf32> -> vector<32x8xf32>
    %c0_42 = arith.constant 0 : index
    %c0_43 = arith.constant 0 : index
    %52 = vector.load %arg8[%c0_42, %c0_43] : memref<32x32xf32, #tpu.memory_space<vmem>>, vector<32x32xf32>
    %cst_44 = arith.constant dense<0.000000e+00> : vector<32x8xf32>
    %53 = tpu.matmul %52, %36, %cst_44 {dimension_numbers = #tpu.dot_dimension_numbers<[1], [0], [0], [1], [0, 0, 1, 1], [], []>} : vector<32x32xf32>, vector<32x8xf32>, vector<32x8xf32> -> vector<32x8xf32>
    %54 = arith.addf %51, %53 : vector<32x8xf32>
    %c0_45 = arith.constant 0 : index
    %c0_46 = arith.constant 0 : index
    %55 = vector.load %arg9[%c0_45, %c0_46] : memref<32x8xf32, #tpu.memory_space<vmem>>, vector<32x8xf32>
    %56 = arith.addf %54, %55 : vector<32x8xf32>
    %cst_47 = arith.constant 0.000000e+00 : f32
    %57 = vector.broadcast %cst_47 : f32 to vector<32x8xf32>
    %58 = arith.subf %57, %56 : vector<32x8xf32>
    %59 = math.exp %58 : vector<32x8xf32>
    %cst_48 = arith.constant 1.000000e+00 : f32
    %60 = vector.broadcast %cst_48 : f32 to vector<32x8xf32>
    %61 = arith.addf %60, %59 : vector<32x8xf32>
    %62 = tpu.reciprocal %61 {approx = true} : vector<32x8xf32> -> vector<32x8xf32>
    %63 = arith.mulf %62, %36 : vector<32x8xf32>
    %c0_49 = arith.constant 0 : index
    %c0_50 = arith.constant 0 : index
    %64 = vector.load %arg10[%c0_49, %c0_50] : memref<32x32xf32, #tpu.memory_space<vmem>>, vector<32x32xf32>
    %cst_51 = arith.constant dense<0.000000e+00> : vector<32x8xf32>
    %65 = tpu.matmul %64, %35, %cst_51 {dimension_numbers = #tpu.dot_dimension_numbers<[1], [1], [0], [0], [0, 0, 1, 0], [], []>} : vector<32x32xf32>, vector<8x32xf32>, vector<32x8xf32> -> vector<32x8xf32>
    %c0_52 = arith.constant 0 : index
    %c0_53 = arith.constant 0 : index
    %66 = vector.load %arg11[%c0_52, %c0_53] : memref<32x32xf32, #tpu.memory_space<vmem>>, vector<32x32xf32>
    %cst_54 = arith.constant dense<0.000000e+00> : vector<32x8xf32>
    %67 = tpu.matmul %66, %63, %cst_54 {dimension_numbers = #tpu.dot_dimension_numbers<[1], [0], [0], [1], [0, 0, 1, 1], [], []>} : vector<32x32xf32>, vector<32x8xf32>, vector<32x8xf32> -> vector<32x8xf32>
    %68 = arith.addf %65, %67 : vector<32x8xf32>
    %c0_55 = arith.constant 0 : index
    %c0_56 = arith.constant 0 : index
    %69 = vector.load %arg12[%c0_55, %c0_56] : memref<32x8xf32, #tpu.memory_space<vmem>>, vector<32x8xf32>
    %70 = arith.addf %68, %69 : vector<32x8xf32>
    %71 = math.tanh %70 : vector<32x8xf32>
    %cst_57 = arith.constant 1.000000e+00 : f32
    %72 = vector.broadcast %cst_57 : f32 to vector<32x8xf32>
    %73 = arith.subf %72, %49 : vector<32x8xf32>
    %74 = arith.mulf %73, %36 : vector<32x8xf32>
    %75 = arith.mulf %49, %71 : vector<32x8xf32>
    %76 = arith.addf %74, %75 : vector<32x8xf32>
    %c0_58 = arith.constant 0 : index
    %c0_59 = arith.constant 0 : index
    %77 = vector.load %arg13[%c0_58, %c0_59] : memref<32x8xf32, #tpu.memory_space<vmem>>, vector<32x8xf32>
    tpu.vector_store %arg13[%c0_58, %c0_59], %76 {strides = array<i32>} : memref<32x8xf32, #tpu.memory_space<vmem>>, vector<32x8xf32>,
    return
  }
}

</mosaic_0001>

<bundles_post_ra>
// kernel: mat_gru_cell.1
= control target key start
LH: loop header
LB: loop body
LE: loop exit
PB: predicated region body
PF: predicated region fallthrough
CT: control target
= control target key end

     0   :  { %s874_s0 = inlined_call_operand.vmem [shape: s32[8], index: 0, kind: input, shape index: {}]   ;;  %s875_s1 = inlined_call_operand.vmem [shape: f32[8,1], index: 1, kind: input, shape index: {}]   ;;  %s876_s2 = inlined_call_operand.vmem [shape: f32[64,32], index: 2, kind: input, shape index: {}]   ;;  %s877_s3 = inlined_call_operand.vmem [shape: f32[32,8], index: 3, kind: input, shape index: {}]   ;;  %s878_s4 = inlined_call_operand.vmem [shape: f32[32,32], index: 4, kind: input, shape index: {}]   ;;  %s879_s5 = inlined_call_operand.vmem [shape: f32[32,32], index: 5, kind: input, shape index: {}]   ;;  %s880_s6 = inlined_call_operand.vmem [shape: f32[32,8], index: 6, kind: input, shape index: {}]   ;;  %s881_s7 = inlined_call_operand.vmem [shape: f32[32,32], index: 7, kind: input, shape index: {}]   ;;  %s882_s8 = inlined_call_operand.vmem [shape: f32[32,32], index: 8, kind: input, shape index: {}]   ;;  %s883_s9 = inlined_call_operand.vmem [shape: f32[32,8], index: 9, kind: input, shape index: {}]   ;;  %s884_s10 = inlined_call_operand.vmem [shape: f32[32,32], index: 10, kind: input, shape index: {}]   ;;  %s885_s11 = inlined_call_operand.vmem [shape: f32[32,32], index: 11, kind: input, shape index: {}]   ;;  %s886_s12 = inlined_call_operand.vmem [shape: f32[32,8], index: 12, kind: input, shape index: {}]   ;;  %s887_s13 = inlined_call_operand.vmem [shape: f32[32,8], index: 13, kind: output, shape index: {}]  }
   0x1   :  { %890 = sst [smem:[#allocation6_spill]] %s886_s12 }
   0x2   :  { %891 = sst [smem:[#allocation7_spill]] %s887_s13 }
   0x3   :  { %18 = vsyncpa [#allocation4], 0  ;;  %s24_s27 = sshll.u32 %s874_s0, 4  ;;  %s575_s28 = smov [#allocation3]   ;;  %s25_s27 = int_to_ptr.vmem [resolvable:$true] %s24_s27 }
   0x4   :  { %27 = dma.vmem_to_smem %s25_s27, 16, %s575_s28, [#allocation4]  }
   0x5   :  { %573 = dma.done.wait [#allocation4], 16  }
   0x6   :  { %574 = vsyncadd [#allocation4], 4294967280 }
   0x7   :  { %56 = sfence }
   0x8   :  { %v91_v0 = vld [vmem:[%s875_s1] sm:$0xff]  ;;  %v656_v1 = vld [vmem:[%s877_s3 + $0x18] sm:$0xff]  ;;  %v661_v2 = vld [vmem:[%s877_s3 + $0x10] sm:$0xff]  ;;  %v576_v3 = vmov 0   ;;  %vm110_vm0 = vcmask 261120   ;;  %s57_s27 = sld [smem:[#allocation3]] }
   0x9   :  { %520 = vset.pattern.permute.xlu0 %v576_v3  ;;  %256 = vmatpush.msra.mxu2 %v656_v1  ;;  %v667_v4 = vld [vmem:[%s877_s3 + $0x8] sm:$0xff]  ;;  %v674_v5 = vld [vmem:[%s877_s3] sm:$0xff]  ;;  %v230_v8 = vld [vmem:[%s882_s8 + $0x10] sm:$0xff]  ;;  %s482_s28 = sld [smem:[#allocation3 + $0x1]]  ;;  %vm60_vm1 = vcmask 253952   ;;  %vm464_vm2 = vcmask 64512  }
   0xa   :  { %94 = vperm.xlu0 %520, %v91_v0   ;;  %135 = vmatpush.msra.mxu0 %v656_v1  ;;  %v228_v6 = vld [vmem:[%s882_s8] sm:$0xff]  ;;  %v229_v7 = vld [vmem:[%s882_s8 + $0x8] sm:$0xff]  ;;  %v231_v9 = vld [vmem:[%s882_s8 + $0x18] sm:$0xff]  ;;  %s483_s29 = sld [smem:[#allocation3 + $0x2]] }
   0xb   :  { %257 = vmatpush.msra.mxu2 %v661_v2  ;;  %s484_s30 = sld [smem:[#allocation3 + $0x3]]  ;;  %v224_v21 = vld [vmem:[%s881_s7] sm:$0xff]  ;;  %v225_v22 = vld [vmem:[%s881_s7 + $0x8] sm:$0xff]  ;;  %v226_v23 = vld [vmem:[%s881_s7 + $0x10] sm:$0xff] }
   0xc   :  { %136 = vmatpush.msra.mxu0 %v661_v2  ;;  %s485_s14 = sld [smem:[#allocation3 + $0x4]]  ;;  %v227_v24 = vld [vmem:[%s881_s7 + $0x18] sm:$0xff]  ;;  %v106_v25 = vld [vmem:[%s879_s5] sm:$0xff]  ;;  %v107_v27 = vld [vmem:[%s879_s5 + $0x8] sm:$0xff] }
   0xd   :  { %258 = vmatpush.msra.mxu2 %v667_v4  ;;  %s486_s15 = sld [smem:[#allocation3 + $0x5]]  ;;  %v108_v29 = vld [vmem:[%s879_s5 + $0x10] sm:$0xff]  ;;  %v109_v31 = vld [vmem:[%s879_s5 + $0x18] sm:$0xff]  ;;  %v103_v32 = vld [vmem:[%s878_s4 + $0x8] sm:$0xff] }
   0xe   :  { %137 = vmatpush.msra.mxu0 %v667_v4  ;;  %s487_s16 = sld [smem:[#allocation3 + $0x6]]  ;;  %s58_s1 = scalar_lea.vmem %s876_s2, %s57_s27  ;;  %v102_v34 = vld [vmem:[%s878_s4] sm:$0xff]  ;;  %v104_v36 = vld [vmem:[%s878_s4 + $0x10] sm:$0xff]  ;;  %v315_v40 = vld [vmem:[%s883_s9 + $0x8] sm:$0xff] }
   0xf   :  { %259 = vmatpush.msra.mxu2 %v674_v5  ;;  %s488_s17 = sld [smem:[#allocation3 + $0x7]]  ;;  %s63_s21 = scalar_lea.vmem %s876_s2, %s482_s28  ;;  %v59_v10 = vld [vmem:[%s58_s1] sm:$0x1]  ;;  %v316_v42 = vld [vmem:[%s883_s9 + $0x10] sm:$0xff]  ;;  %v105_v43 = vld [vmem:[%s878_s4 + $0x18] sm:$0xff] }
  0x10   :  { %498 = vmatmul.msk.f32.vlgmr.msra.gmra.mxu2 %vm110_vm0, %v228_v6  ;;  %138 = vmatpush.msra.mxu0 %v674_v5  ;;  %s67_s3 = scalar_lea.vmem %s876_s2, %s483_s29  ;;  %v64_v11 = vld [vmem:[%s63_s21] sm:$0x1]  ;;  %61 = vst.msk [vmem:[#allocation2] sm:$0x1] %vm60_vm1, %v59_v10  ;;  %v317_v55 = vld [vmem:[%s883_s9 + $0x18] sm:$0xff]  ;;  %v347_v57 = vld [vmem:[%s884_s10 + $0x8] sm:$0xff] }
  0x11   :  { %s71_s25 = scalar_lea.vmem %s876_s2, %s484_s30  ;;  %v68_v12 = vld [vmem:[%s67_s3] sm:$0x1]  ;;  %65 = vst.msk [vmem:[#allocation2 + $0x1] sm:$0x1] %vm60_vm1, %v64_v11  ;;  %489 = vmatmul.msk.f32.vlgmr.msra.gmra.mxu0 %vm110_vm0, %v106_v25  ;;  %v348_v0 = vld [vmem:[%s884_s10 + $0x10] sm:$0xff]  ;;  %s893_s4 = sld [smem:[#allocation7_spill]] }
  0x12   :  { %s75_s12 = scalar_lea.vmem %s876_s2, %s485_s14  ;;  %v72_v13 = vld [vmem:[%s71_s25] sm:$0x1]  ;;  %69 = vst.msk [vmem:[#allocation2 + $0x2] sm:$0x1] %vm60_vm1, %v68_v12  ;;  %v349_v12 = vld [vmem:[%s884_s10 + $0x18] sm:$0xff] }
  0x13   :  { %s79_s18 = scalar_lea.vmem %s876_s2, %s486_s15  ;;  %v76_v14 = vld [vmem:[%s75_s12] sm:$0x1]  ;;  %73 = vst.msk [vmem:[#allocation2 + $0x3] sm:$0x1] %vm60_vm1, %v72_v13  ;;  %s892_s15 = sld [smem:[#allocation6_spill]] }
  0x14   :  { %s83_s19 = scalar_lea.vmem %s876_s2, %s487_s16  ;;  %v80_v15 = vld [vmem:[%s79_s18] sm:$0x1]  ;;  %77 = vst.msk [vmem:[#allocation2 + $0x4] sm:$0x1] %vm60_vm1, %v76_v14 }
  0x15   :  { %s87_s14 = scalar_lea.vmem %s876_s2, %s488_s17  ;;  %v84_v16 = vld [vmem:[%s83_s19] sm:$0x1]  ;;  %81 = vst.msk [vmem:[#allocation2 + $0x5] sm:$0x1] %vm60_vm1, %v80_v15 }
  0x16   :  { %v88_v17 = vld [vmem:[%s87_s14] sm:$0x1]  ;;  %85 = vst.msk [vmem:[#allocation2 + $0x6] sm:$0x1] %vm60_vm1, %v84_v16 }
  0x17   :  { %89 = vst.msk [vmem:[#allocation2 + $0x7] sm:$0x1] %vm60_vm1, %v88_v17  ;;  %v314_v44 = vld [vmem:[%s883_s9] sm:$0xff] }
  0x18   :  { %499 = vmatmul.msk.f32.gmra.mxu2 %vm110_vm0, %v229_v7  ;;  %v346_v48 = vld [vmem:[%s884_s10] sm:$0xff] }
  0x19   :  { %490 = vmatmul.msk.f32.gmra.mxu0 %vm110_vm0, %v107_v27 }
  0x1e   :  { %v90_v18 = vld [vmem:[#allocation2] sm:$0xff] }
  0x20   :  { %500 = vmatmul.msk.f32.gmra.mxu2 %vm110_vm0, %v230_v8 }
  0x21   :  { %491 = vmatmul.msk.f32.gmra.mxu0 %vm110_vm0, %v108_v29 }
  0x28   :  { %501 = vmatmul.msk.f32.gmra.mxu2 %vm110_vm0, %v231_v9 }
  0x29   :  { %492 = vmatmul.msk.f32.gmra.mxu0 %vm110_vm0, %v109_v31 }
  0x7c   :  { %v95_v19 = vpop.permute.xlu0 %94 }
  0x7d   :  { %v97_v20 = vmul.f32 %v95_v19, %v90_v18 }
  0x7f   :  { %493 = vmatpush.xpose.msk.msrb.mxu0 %vm110_vm0, %v97_v20  ;;  %516 = vmatpush.xpose.msk.msra.mxu1 %vm110_vm0, %v97_v20 }
  0x80   :  { %502 = vmatpush.xpose.msk.msrb.mxu2 %vm110_vm0, %v97_v20  ;;  %517 = vmatpush.xpose.msk.msra.mxu3 %vm110_vm0, %v97_v20 }
  0x82   :  { %495 = vmatmul.msk.f32.vlgmr.msra.gmra.mxu1 %vm110_vm0, %v103_v32  ;;  %494 = vmatmul.msk.f32.vlgmr.msrb.gmra.mxu0 %vm110_vm0, %v102_v34  ;;  %v196_v32 = vld [vmem:[%s880_s6] sm:$0xff] }
  0x83   :  { %503 = vmatmul.msk.f32.vlgmr.msrb.gmra.mxu2 %vm110_vm0, %v224_v21  ;;  %504 = vmatmul.msk.f32.vlgmr.msra.gmra.mxu3 %vm110_vm0, %v225_v22  ;;  %v350_v21 = vld [vmem:[%s885_s11] sm:$0xff]  ;;  %v351_v22 = vld [vmem:[%s885_s11 + $0x8] sm:$0xff] }
  0x84   :  { %511 = vmatpush.xpose.msk.msrb.mxu3 %vm110_vm0, %v97_v20 }
  0x8a   :  { %496 = vmatmul.msk.f32.gmra.mxu1 %vm110_vm0, %v104_v36  ;;  %v197_v36 = vld [vmem:[%s880_s6 + $0x8] sm:$0xff] }
  0x8b   :  { %505 = vmatmul.msk.f32.gmra.mxu3 %vm110_vm0, %v226_v23  ;;  %v352_v23 = vld [vmem:[%s885_s11 + $0x10] sm:$0xff] }
  0x8e   :  { %v140_v25 = vpop.f32.mrf.mxu0 }
  0x92   :  { %497 = vmatmul.msk.f32.gmra.mxu1 %vm110_vm0, %v105_v43 }
  0x93   :  { %506 = vmatmul.msk.f32.gmra.mxu3 %vm110_vm0, %v227_v24  ;;  %v261_v26 = vpop.f32.mrf.mxu2  ;;  %v353_v24 = vld [vmem:[%s885_s11 + $0x18] sm:$0xff] }
  0x9b   :  { %v264_v28 = vpop.f32.mrf.mxu2  ;;  %512 = vmatmul.msk.f32.vlgmr.msrb.gmra.mxu3 %vm110_vm0, %v346_v48 }
  0xa3   :  { %v267_v30 = vpop.f32.mrf.mxu2  ;;  %513 = vmatmul.msk.f32.gmra.mxu3 %vm110_vm0, %v347_v57 }
  0xab   :  { %v270_v33 = vpop.f32.mrf.mxu2  ;;  %514 = vmatmul.msk.f32.gmra.mxu3 %vm110_vm0, %v348_v0 }
  0xb3   :  { %515 = vmatmul.msk.f32.gmra.mxu3 %vm110_vm0, %v349_v12 }
 0x106   :  { %v305_v35 = vpop.f32.mrf.mxu3  ;;  %v302_v37 = vpop.f32.mrf.mxu2 }
 0x107   :  { %v306_v38 = vadd.f32 %v305_v35, %v264_v28  ;;  %v303_v39 = vadd.f32 %v302_v37, %v261_v26  ;;  %v143_v26 = vpop.f32.mrf.mxu0 }
 0x109   :  { %v319_v46 = vadd.f32 %v315_v40, %v306_v38  ;;  %v318_v49 = vadd.f32 %v314_v44, %v303_v39 }
 0x10b   :  { %v323_v51 = vsub.f32 0.0, %v319_v46  ;;  %v322_v52 = vsub.f32 0.0, %v318_v49 }
 0x10d   :  { %v328_v58 = vmul.f32 1.442695, %v323_v51  ;;  %v326_v60 = vmul.f32 1.442695, %v322_v52  ;;  %v199_v51 = vld [vmem:[%s880_s6 + $0x18] sm:$0xff] }
 0x10e   :  { %v308_v41 = vpop.f32.mrf.mxu3 }
 0x10f   :  { %v309_v45 = vadd.f32 %v308_v41, %v267_v30  ;;  %v146_v27 = vpop.f32.mrf.mxu0  ;;  %v187_v30 = vpop.f32.mrf.mxu1 }
 0x110   :  { %v188_v34 = vadd.f32 %v187_v30, %v143_v26 }
 0x111   :  { %v320_v47 = vadd.f32 %v316_v42, %v309_v45  ;;  %v198_v42 = vld [vmem:[%s880_s6 + $0x10] sm:$0xff] }
 0x112   :  { %v201_v38 = vadd.f32 %v197_v36, %v188_v34 }
 0x113   :  { %v324_v50 = vsub.f32 0.0, %v320_v47 }
 0x114   :  { %v205_v40 = vsub.f32 0.0, %v201_v38 }
 0x115   :  { %v330_v53 = vmul.f32 1.442695, %v324_v50 }
 0x116   :  { %v311_v54 = vpop.f32.mrf.mxu3  ;;  %v210_v43 = vmul.f32 1.442695, %v205_v40 }
 0x117   :  { %v312_v56 = vadd.f32 %v311_v54, %v270_v33  ;;  %521 = vpow2.f32 %v330_v53  ;;  %v149_v28 = vpop.f32.mrf.mxu0  ;;  %v190_v37 = vpop.f32.mrf.mxu1 }
 0x118   :  { %523 = vpow2.f32 %v328_v58  ;;  %v191_v41 = vadd.f32 %v190_v37, %v146_v27 }
 0x119   :  { %v321_v59 = vadd.f32 %v317_v55, %v312_v56  ;;  %525 = vpow2.f32 %v326_v60  ;;  %v436_v56 = vld [vmem:[%s892_s15] sm:$0xff] }
 0x11a   :  { %v202_v44 = vadd.f32 %v198_v42, %v191_v41 }
 0x11b   :  { %v325_v61 = vsub.f32 0.0, %v321_v59 }
 0x11c   :  { %v206_v48 = vsub.f32 0.0, %v202_v44 }
 0x11d   :  { %v332_v62 = vmul.f32 1.442695, %v325_v61  ;;  %v522_v63 = vpop.eup %521 }
 0x11e   :  { %v524_v3 = vpop.eup %523  ;;  %v336_v6 = vadd.f32 1.0, %v522_v63  ;;  %v424_v47 = vpop.f32.mrf.mxu3  ;;  %v212_v52 = vmul.f32 1.442695, %v206_v48 }
 0x11f   :  { %527 = vpow2.f32 %v332_v62  ;;  %v526_v7 = vpop.eup %525  ;;  %v335_v9 = vadd.f32 1.0, %v524_v3  ;;  %v184_v29 = vpop.f32.mrf.mxu0 }
 0x120   :  { %529 = vrcp.f32 %v336_v6  ;;  %v334_v11 = vadd.f32 1.0, %v526_v7  ;;  %v185_v31 = vadd.f32 %v184_v29, %v140_v25  ;;  %v193_v45 = vpop.f32.mrf.mxu1  ;;  %v437_v7 = vld [vmem:[%s892_s15 + $0x8] sm:$0xff] }
 0x121   :  { %v194_v49 = vadd.f32 %v193_v45, %v149_v28 }
 0x122   :  { %v200_v33 = vadd.f32 %v196_v32, %v185_v31  ;;  %v439_v31 = vld [vmem:[%s892_s15 + $0x18] sm:$0xff] }
 0x123   :  { %v203_v53 = vadd.f32 %v199_v51, %v194_v49 }
 0x124   :  { %v204_v35 = vsub.f32 0.0, %v200_v33 }
 0x125   :  { %v528_v8 = vpop.eup %527  ;;  %v207_v58 = vsub.f32 0.0, %v203_v53 }
 0x126   :  { %v337_v10 = vadd.f32 1.0, %v528_v8  ;;  %v530_v13 = vpop.eup %529  ;;  %v208_v39 = vmul.f32 1.442695, %v204_v35  ;;  %v427_v59 = vpop.f32.mrf.mxu3 }
 0x127   :  { %v344_v17 = vmul.f32 %v530_v13, %v661_v2  ;;  %v214_v63 = vmul.f32 1.442695, %v207_v58 }
 0x128   :  { %531 = vrcp.f32 %v337_v10 }
 0x129   :  { %533 = vrcp.f32 %v335_v9 }
 0x12a   :  { %535 = vrcp.f32 %v334_v11 }
 0x12b   :  { %537 = vpow2.f32 %v208_v39 }
 0x12c   :  { %539 = vpow2.f32 %v210_v43 }
 0x12e   :  { %v532_v14 = vpop.eup %531 }
 0x12f   :  { %v345_v15 = vmul.f32 %v532_v14, %v656_v1  ;;  %v534_v16 = vpop.eup %533  ;;  %v430_v14 = vpop.f32.mrf.mxu3 }
 0x130   :  { %v536_v18 = vpop.eup %535  ;;  %v343_v19 = vmul.f32 %v534_v16, %v667_v4 }
 0x131   :  { %378 = vmatpush.msrb.mxu1 %v345_v15  ;;  %v342_v20 = vmul.f32 %v536_v18, %v674_v5  ;;  %v538_v46 = vpop.eup %537 }
 0x132   :  { %v216_v50 = vadd.f32 1.0, %v538_v46  ;;  %v540_v54 = vpop.eup %539 }
 0x133   :  { %379 = vmatpush.msrb.mxu1 %v344_v17  ;;  %v217_v60 = vadd.f32 1.0, %v540_v54 }
 0x134   :  { %541 = vrcp.f32 %v216_v50 }
 0x135   :  { %380 = vmatpush.msrb.mxu1 %v343_v19  ;;  %543 = vpow2.f32 %v212_v52 }
 0x137   :  { %381 = vmatpush.msrb.mxu1 %v342_v20  ;;  %v438_v20 = vld [vmem:[%s892_s15 + $0x10] sm:$0xff]  ;;  %v433_v28 = vpop.f32.mrf.mxu3 }
 0x138   :  { %507 = vmatmul.msk.f32.vlgmr.msrb.gmra.mxu1 %vm110_vm0, %v350_v21 }
 0x13a   :  { %v542_v62 = vpop.eup %541 }
 0x13b   :  { %v544_v0 = vpop.eup %543  ;;  %v448_v3 = vsub.f32 1.0, %v542_v62 }
 0x13c   :  { %v218_v10 = vadd.f32 1.0, %v544_v0 }
 0x13d   :  { %v452_v12 = vmul.f32 %v448_v3, %v674_v5 }
 0x140   :  { %508 = vmatmul.msk.f32.gmra.mxu1 %vm110_vm0, %v351_v22 }
 0x148   :  { %509 = vmatmul.msk.f32.gmra.mxu1 %vm110_vm0, %v352_v23 }
 0x150   :  { %510 = vmatmul.msk.f32.gmra.mxu1 %vm110_vm0, %v353_v24 }
 0x1b5   :  { %v383_v55 = vpop.f32.mrf.mxu1 }
 0x1b6   :  { %v425_v57 = vadd.f32 %v424_v47, %v383_v55 }
 0x1b8   :  { %v440_v61 = vadd.f32 %v436_v56, %v425_v57 }
 0x1ba   :  { %545 = vtanh.f32 %v440_v61 }
 0x1bb   :  { %547 = vrcp.f32 %v217_v60 }
 0x1bc   :  { %549 = vpow2.f32 %v214_v63 }
 0x1bd   :  { %v386_v6 = vpop.f32.mrf.mxu1 }
 0x1be   :  { %v428_v8 = vadd.f32 %v427_v59, %v386_v6 }
 0x1c0   :  { %v546_v9 = vpop.eup %545  ;;  %v441_v11 = vadd.f32 %v437_v7, %v428_v8 }
 0x1c1   :  { %v456_v13 = vmul.f32 %v546_v9, %v542_v62  ;;  %v548_v15 = vpop.eup %547 }
 0x1c2   :  { %551 = vtanh.f32 %v441_v11  ;;  %v550_v17 = vpop.eup %549  ;;  %v449_v18 = vsub.f32 1.0, %v548_v15 }
 0x1c3   :  { %v460_v16 = vadd.f32 %v456_v13, %v452_v12  ;;  %553 = vrcp.f32 %v218_v10  ;;  %v219_v22 = vadd.f32 1.0, %v550_v17 }
 0x1c4   :  { %v453_v24 = vmul.f32 %v449_v18, %v667_v4 }
 0x1c5   :  { %465 = vst.msk [vmem:[%s893_s4] sm:$0xff] %vm464_vm2, %v460_v16  ;;  %v389_v19 = vpop.f32.mrf.mxu1 }
 0x1c6   :  { %v431_v5 = vadd.f32 %v430_v14, %v389_v19 }
 0x1c8   :  { %v552_v21 = vpop.eup %551  ;;  %v442_v23 = vadd.f32 %v438_v20, %v431_v5 }
 0x1c9   :  { %v457_v25 = vmul.f32 %v552_v21, %v548_v15  ;;  %v554_v26 = vpop.eup %553 }
 0x1ca   :  { %555 = vtanh.f32 %v442_v23  ;;  %v450_v29 = vsub.f32 1.0, %v554_v26 }
 0x1cb   :  { %v461_v27 = vadd.f32 %v457_v25, %v453_v24  ;;  %557 = vrcp.f32 %v219_v22 }
 0x1cc   :  { %v454_v34 = vmul.f32 %v450_v29, %v661_v2 }
 0x1cd   :  { %466 = vst.msk [vmem:[%s893_s4 + $0x8] sm:$0xff] %vm464_vm2, %v461_v27  ;;  %v392_v30 = vpop.f32.mrf.mxu1 }
 0x1ce   :  { %v434_v32 = vadd.f32 %v433_v28, %v392_v30 }
 0x1d0   :  { %v556_v33 = vpop.eup %555  ;;  %v443_v4 = vadd.f32 %v439_v31, %v434_v32 }
 0x1d1   :  { %v458_v35 = vmul.f32 %v556_v33, %v554_v26  ;;  %v558_v36 = vpop.eup %557 }
 0x1d2   :  { %559 = vtanh.f32 %v443_v4  ;;  %v451_v38 = vsub.f32 1.0, %v558_v36 }
 0x1d3   :  { %v462_v37 = vadd.f32 %v458_v35, %v454_v34 }
 0x1d4   :  { %v455_v40 = vmul.f32 %v451_v38, %v656_v1 }
 0x1d5   :  { %467 = vst.msk [vmem:[%s893_s4 + $0x10] sm:$0xff] %vm464_vm2, %v462_v37 }
 0x1d8   :  { %v560_v39 = vpop.eup %559 }
 0x1d9   :  { %v459_v41 = vmul.f32 %v560_v39, %v558_v36 }
 0x1db   :  { %v463_v42 = vadd.f32 %v459_v41, %v455_v40 }
 0x1dd   :  { %468 = vst.msk [vmem:[%s893_s4 + $0x18] sm:$0xff] %vm464_vm2, %v463_v42 }
 0x1de   :  { %473 = vsyncpa [#allocation4], 1 }

</bundles_post_ra>
